<compile_context>
chip_gen: v6e
topology: v6e:2x2x1
jax: 0.10.0
libtpu: 0.0.40
codegen_flags: <defaults>
</compile_context>

<pallas_src>
import functools

import jax
import jax.numpy as jnp
from jax.experimental import pallas as pl
from jax.experimental.pallas import tpu as pltpu

T_SOFTMAX = 10.0       # AttentionLayer.T
_NUM_PARALLEL = 2      # leading parallel grid axis (megacore on v7x)
_SUBLANES = 8


def _round_up(x, m):
    return (x + m - 1) // m * m


# ----------------------------------------------------------------------------
# Kernel A: attention MLP + softmax, accumulate per-core batch-sums of attn.
# ----------------------------------------------------------------------------
def attn_weights_kernel(x_ref, k_ref,
                        w1_ref, b1_ref,
                        w2_ref, b2_ref,
                        w3_ref, b3_ref,
                        wsum_ref,
                        *, batch, tile_b, n_num):
    j = pl.program_id(1)
    # logical batch-tile index (parallel core c owns tiles [c*half, (c+1)*half))
    t = pl.program_id(0) * pl.num_programs(1) + j

    # cat((x, k), 1) built in-register; bf16 MXU operands, f32 accumulation.
    yb = jnp.concatenate([x_ref[...], k_ref[...]], axis=-1).astype(jnp.bfloat16)

    h1 = jnp.dot(yb, w1_ref[...], preferred_element_type=jnp.float32)
    h1 = jnp.maximum(h1 + b1_ref[...], 0.0)

    h2 = jnp.dot(h1.astype(jnp.bfloat16), w2_ref[...],
                 preferred_element_type=jnp.float32)
    h2 = jnp.maximum(h2 + b2_ref[...], 0.0)

    logits = jnp.dot(h2.astype(jnp.bfloat16), w3_ref[...],
                     preferred_element_type=jnp.float32) + b3_ref[...]

    # softmax(sigmoid(logits) / T, axis=1)
    s = jax.nn.sigmoid(logits) * (1.0 / T_SOFTMAX)
    if n_num == 2:
        # closed form for 2 classes: softmax([s0, s1])[0] == sigmoid(s0 - s1)
        a0 = jax.nn.sigmoid(s[:, 0:1] - s[:, 1:2])
        attn = jnp.concatenate([a0, 1.0 - a0], axis=-1)
    else:
        e = jnp.exp(s)  # s is bounded to [0, 1/T]; no max-subtraction needed
        attn = e / jnp.sum(e, axis=-1, keepdims=True)

    # Mask rows past the real batch (ragged last tile / overhanging core-1
    # tiles) so they don't pollute the mean. Garbage (even NaN) in those rows
    # is discarded by the select.
    rows = t * tile_b + jax.lax.broadcasted_iota(jnp.int32, (tile_b, 1), 0)
    attn = jnp.where(rows < batch, attn, 0.0)

    part = jnp.sum(attn, axis=0, keepdims=True)            # [1, n_num]
    part = jnp.broadcast_to(part, wsum_ref.shape)          # [8, n_num]

    @pl.when(j == 0)
    def _():
        wsum_ref[...] = part

    @pl.when(j > 0)
    def _():
        wsum_ref[...] += part


# ----------------------------------------------------------------------------
# Kernel B: x_TMP = weights[0] * x + weights[1] * k  (weights in SMEM).
# ----------------------------------------------------------------------------
def fuse_kernel(w_ref, x_ref, k_ref, o_ref):
    o_ref[...] = w_ref[0] * x_ref[...] + w_ref[1] * k_ref[...]


# ----------------------------------------------------------------------------
# Wrapper
# ----------------------------------------------------------------------------
def fusion_forward(x, k, params, *, tile_b=2048):
    B, D = x.shape
    d_in, n_enc1 = params["w1"].shape        # (2D, 500)
    n_enc2 = params["w2"].shape[1]           # 100
    n_num = params["w3"].shape[1]            # 2
    assert d_in == 2 * D

    # -------------------- Kernel A: attention weights --------------------
    # Batch tile: multiple of 8 (or == B when tiny), capped at 2048 which
    # keeps the h1/h2 scratch well under the 32 MiB scoped VMEM limit on
    # every generation (v7x included). No wrapper-side padding copy.
    tile = min(tile_b, _round_up(B, _SUBLANES))
    num_tiles = pl.cdiv(B, tile)
    half = pl.cdiv(num_tiles, _NUM_PARALLEL)

    w1b = params["w1"].astype(jnp.bfloat16)
    w2b = params["w2"].astype(jnp.bfloat16)
    w3b = params["w3"].astype(jnp.bfloat16)

    def xk_map(c, j):
        # Clamp so an overhanging core-1 tile never indexes past the array;
        # its rows are masked out in-kernel anyway.
        return (jnp.minimum(c * half + j, num_tiles - 1), 0)

    def const_map(c, j):
        return (0, 0)

    kernel_a = functools.partial(attn_weights_kernel,
                                 batch=B, tile_b=tile, n_num=n_num)

    flops_a = 2 * B * (d_in * n_enc1 + n_enc1 * n_enc2 + n_enc2 * n_num)
    bytes_a = (2 * B * D * 4
               + (d_in * n_enc1 + n_enc1 * n_enc2 + n_enc2 * n_num) * 2
               + (n_enc1 + n_enc2 + n_num) * 4
               + _NUM_PARALLEL * _SUBLANES * n_num * 4)

    wsum = pl.pallas_call(
        kernel_a,
        out_shape=jax.ShapeDtypeStruct((_NUM_PARALLEL * _SUBLANES, n_num),
                                       jnp.float32),
        grid=(_NUM_PARALLEL, half),
        in_specs=[
            pl.BlockSpec((tile, D), xk_map),            # x tile
            pl.BlockSpec((tile, D), xk_map),            # k tile
            pl.BlockSpec((d_in, n_enc1), const_map),    # W1 (resident)
            pl.BlockSpec((1, n_enc1), const_map),       # b1
            pl.BlockSpec((n_enc1, n_enc2), const_map),  # W2
            pl.BlockSpec((1, n_enc2), const_map),       # b2
            pl.BlockSpec((n_enc2, n_num), const_map),   # W3
            pl.BlockSpec((1, n_num), const_map),        # b3
        ],
        out_specs=pl.BlockSpec((_SUBLANES, n_num), lambda c, j: (c, 0)),
        compiler_params=pltpu.CompilerParams(
            dimension_semantics=("parallel", "arbitrary"),
            vmem_limit_bytes=32 * 1024 * 1024),
        cost_estimate=pl.CostEstimate(
            flops=flops_a,
            transcendentals=2 * B * n_num,
            bytes_accessed=bytes_a),
    )(x, k, w1b, params["b1"], w2b, params["b2"], w3b, params["b3"])

    # per-core, sublane-replicated partial sums -> batch mean
    weights = wsum[::_SUBLANES].sum(axis=0) * (1.0 / B)     # [n_num], f32

    # -------------------- Kernel B: w0*x + w1*k --------------------
    # Elementwise, so present a lane-dense view (free contiguous reshape) and
    # stream ~2 MiB blocks; falls back to the (B, D) layout if B*D is not a
    # multiple of 128.
    total = B * D
    cols = None
    for c in (512, 256, 128):
        if total % c == 0:
            cols = c
            break
    if cols is not None:
        xv = x.reshape(-1, cols)
        kv = k.reshape(-1, cols)
    else:
        xv, kv = x, k
        cols = D
    rows = xv.shape[0]
    target_rows = max(_SUBLANES,
                      ((2 << 20) // 4 // cols) // _SUBLANES * _SUBLANES)
    rb = rows if rows <= target_rows else target_rows

    fused = pl.pallas_call(
        fuse_kernel,
        out_shape=jax.ShapeDtypeStruct((rows, cols), x.dtype),
        grid=(pl.cdiv(rows, rb),),
        in_specs=[
            pl.BlockSpec(memory_space=pltpu.MemorySpace.SMEM),  # fusion scalars
            pl.BlockSpec((rb, cols), lambda i: (i, 0)),
            pl.BlockSpec((rb, cols), lambda i: (i, 0)),
        ],
        out_specs=pl.BlockSpec((rb, cols), lambda i: (i, 0)),
        compiler_params=pltpu.CompilerParams(
            dimension_semantics=("parallel",),
            vmem_limit_bytes=32 * 1024 * 1024),
        cost_estimate=pl.CostEstimate(
            flops=3 * B * D,
            transcendentals=0,
            bytes_accessed=3 * B * D * 4 + n_num * 4),
    )(weights, xv, kv)

    return fused.reshape(B, D)


# ----------------------------------------------------------------------------
# Parameter init (kaiming-normal weights like the torch module) + reference
# ----------------------------------------------------------------------------
def init_params(key, last_dim, n_num=2):
    d_in = n_num * last_dim
    dims = [("w1", "b1", d_in, 500),
            ("w2", "b2", 500, 100),
            ("w3", "b3", 100, n_num)]
    params = {}
    keys = jax.random.split(key, 2 * len(dims))
    for i, (wn, bn, fin, fout) in enumerate(dims):
        std = (2.0 / fin) ** 0.5                    # kaiming_normal_, fan_in
        params[wn] = std * jax.random.normal(keys[2 * i], (fin, fout),
                                             jnp.float32)
        bound = 1.0 / (fin ** 0.5)                  # default Linear bias init
        params[bn] = jax.random.uniform(keys[2 * i + 1], (1, fout),
                                        jnp.float32, -bound, bound)
    return params


def fusion_reference(x, k, p):
    """Pure-JAX (f32) reference of FusionLayer.forward."""
    y = jnp.concatenate([x, k], axis=1)
    h1 = jax.nn.relu(y @ p["w1"] + p["b1"])
    h2 = jax.nn.relu(h1 @ p["w2"] + p["b2"])
    logits = h2 @ p["w3"] + p["b3"]
    s = jax.nn.sigmoid(logits)
    attn = jax.nn.softmax(s / T_SOFTMAX, axis=1)
    w = jnp.mean(attn, axis=0)                      # [n_num]
    return w[0] * x + w[1] * k


if __name__ == "__main__":
    last_dim = 16
    batch = 8
    n_num = 2

    key = jax.random.PRNGKey(0)
    kx, kk, kp = jax.random.split(key, 3)
    x = jax.random.normal(kx, (batch, last_dim), jnp.float32)
    k = jax.random.normal(kk, (batch, last_dim), jnp.float32)
    params = init_params(kp, last_dim, n_num=n_num)

    out = fusion_forward(x, k, params)
    out = jax.block_until_ready(out)

    ref = fusion_reference(x, k, params)
    assert out.shape == ref.shape and out.dtype == ref.dtype
    # bf16 MXU operands in the attention MLP -> loosened tolerance vs f32 ref.
    assert jnp.allclose(out, ref, atol=5e-3, rtol=5e-3), "mismatch vs reference"

    print("KERNEL_OK")
</pallas_src>

<mosaic_0001>
module attributes {stable_mosaic.version = 11 : i64} {
  func.func @attn_weights_kernel(%arg0: i32, %arg1: i32, %arg2: memref<8x16xf32, #tpu.memory_space<vmem>>, %arg3: memref<8x16xf32, #tpu.memory_space<vmem>>, %arg4: memref<32x500xbf16, #tpu.memory_space<vmem>>, %arg5: memref<1x500xf32, #tpu.memory_space<vmem>>, %arg6: memref<500x100xbf16, #tpu.memory_space<vmem>>, %arg7: memref<1x100xf32, #tpu.memory_space<vmem>>, %arg8: memref<100x2xbf16, #tpu.memory_space<vmem>>, %arg9: memref<1x2xf32, #tpu.memory_space<vmem>>, %arg10: memref<8x2xf32, #tpu.memory_space<vmem>>) attributes {dimension_semantics = [#tpu.dimension_semantics<parallel>, #tpu.dimension_semantics<arbitrary>], iteration_bounds = array<i64: 2, 1>, scalar_prefetch = 0 : i64, scratch_operands = 0 : i64, tpu.core_type = #tpu.core_type<tc>, window_params = [{transform_indices = @transform_0, window_bounds = array<i64: 8, 16>}, {transform_indices = @transform_1, window_bounds = array<i64: 8, 16>}, {pipeline_mode = #tpu.pipeline_mode<synchronous>, transform_indices = @transform_2, window_bounds = array<i64: 32, 500>}, {pipeline_mode = #tpu.pipeline_mode<synchronous>, transform_indices = @transform_3, window_bounds = array<i64: 1, 500>}, {pipeline_mode = #tpu.pipeline_mode<synchronous>, transform_indices = @transform_4, window_bounds = array<i64: 500, 100>}, {pipeline_mode = #tpu.pipeline_mode<synchronous>, transform_indices = @transform_5, window_bounds = array<i64: 1, 100>}, {pipeline_mode = #tpu.pipeline_mode<synchronous>, transform_indices = @transform_6, window_bounds = array<i64: 100, 2>}, {pipeline_mode = #tpu.pipeline_mode<synchronous>, transform_indices = @transform_7, window_bounds = array<i64: 1, 2>}, {transform_indices = @transform_8, window_bounds = array<i64: 8, 2>}]} {
    %c1_i32 = arith.constant 1 : i32
    %0 = arith.muli %arg0, %c1_i32 : i32
    %1 = arith.addi %0, %arg1 : i32
    %c0 = arith.constant 0 : index
    %c0_0 = arith.constant 0 : index
    %2 = vector.load %arg2[%c0, %c0_0] : memref<8x16xf32, #tpu.memory_space<vmem>>, vector<8x16xf32>
    %c0_1 = arith.constant 0 : index
    %c0_2 = arith.constant 0 : index
    %3 = vector.load %arg3[%c0_1, %c0_2] : memref<8x16xf32, #tpu.memory_space<vmem>>, vector<8x16xf32>
    %4 = tpu.concatenate %2, %3 in 1 : vector<8x16xf32>, vector<8x16xf32> -> vector<8x32xf32>
    %5 = arith.truncf %4 : vector<8x32xf32> to vector<8x32xbf16>
    %c0_3 = arith.constant 0 : index
    %c0_4 = arith.constant 0 : index
    %6 = vector.load %arg4[%c0_3, %c0_4] : memref<32x500xbf16, #tpu.memory_space<vmem>>, vector<32x500xbf16>
    %cst = arith.constant dense<0.000000e+00> : vector<8x500xf32>
    %7 = tpu.matmul %5, %6, %cst {dimension_numbers = #tpu.dot_dimension_numbers<[1], [0], [0], [1], [0, 0, 1, 1], [], []>} : vector<8x32xbf16>, vector<32x500xbf16>, vector<8x500xf32> -> vector<8x500xf32>
    %c0_5 = arith.constant 0 : index
    %c0_6 = arith.constant 0 : index
    %8 = vector.load %arg5[%c0_5, %c0_6] : memref<1x500xf32, #tpu.memory_space<vmem>>, vector<1x500xf32>
    %9 = vector.broadcast %8 : vector<1x500xf32> to vector<8x500xf32>
    %10 = arith.addf %7, %9 : vector<8x500xf32>
    %cst_7 = arith.constant 0.000000e+00 : f32
    %11 = vector.broadcast %cst_7 : f32 to vector<8x500xf32>
    %12 = arith.maximumf %10, %11 : vector<8x500xf32>
    %13 = arith.truncf %12 : vector<8x500xf32> to vector<8x500xbf16>
    %c0_8 = arith.constant 0 : index
    %c0_9 = arith.constant 0 : index
    %14 = vector.load %arg6[%c0_8, %c0_9] : memref<500x100xbf16, #tpu.memory_space<vmem>>, vector<500x100xbf16>
    %cst_10 = arith.constant dense<0.000000e+00> : vector<8x100xf32>
    %15 = tpu.matmul %13, %14, %cst_10 {dimension_numbers = #tpu.dot_dimension_numbers<[1], [0], [0], [1], [0, 0, 1, 1], [], []>} : vector<8x500xbf16>, vector<500x100xbf16>, vector<8x100xf32> -> vector<8x100xf32>
    %c0_11 = arith.constant 0 : index
    %c0_12 = arith.constant 0 : index
    %16 = vector.load %arg7[%c0_11, %c0_12] : memref<1x100xf32, #tpu.memory_space<vmem>>, vector<1x100xf32>
    %17 = vector.broadcast %16 : vector<1x100xf32> to vector<8x100xf32>
    %18 = arith.addf %15, %17 : vector<8x100xf32>
    %cst_13 = arith.constant 0.000000e+00 : f32
    %19 = vector.broadcast %cst_13 : f32 to vector<8x100xf32>
    %20 = arith.maximumf %18, %19 : vector<8x100xf32>
    %21 = arith.truncf %20 : vector<8x100xf32> to vector<8x100xbf16>
    %c0_14 = arith.constant 0 : index
    %c0_15 = arith.constant 0 : index
    %22 = vector.load %arg8[%c0_14, %c0_15] : memref<100x2xbf16, #tpu.memory_space<vmem>>, vector<100x2xbf16>
    %cst_16 = arith.constant dense<0.000000e+00> : vector<8x2xf32>
    %23 = tpu.matmul %21, %22, %cst_16 {dimension_numbers = #tpu.dot_dimension_numbers<[1], [0], [0], [1], [0, 0, 1, 1], [], []>} : vector<8x100xbf16>, vector<100x2xbf16>, vector<8x2xf32> -> vector<8x2xf32>
    %c0_17 = arith.constant 0 : index
    %c0_18 = arith.constant 0 : index
    %24 = vector.load %arg9[%c0_17, %c0_18] : memref<1x2xf32, #tpu.memory_space<vmem>>, vector<1x2xf32>
    %25 = vector.broadcast %24 : vector<1x2xf32> to vector<8x2xf32>
    %26 = arith.addf %23, %25 : vector<8x2xf32>
    %27 = arith.negf %26 : vector<8x2xf32>
    %28 = math.exp %27 : vector<8x2xf32>
    %cst_19 = arith.constant 1.000000e+00 : f32
    %29 = vector.broadcast %cst_19 : f32 to vector<8x2xf32>
    %30 = arith.addf %29, %28 : vector<8x2xf32>
    %31 = arith.divf %29, %30 : vector<8x2xf32>
    %cst_20 = arith.constant 1.000000e-01 : f32
    %32 = vector.broadcast %cst_20 : f32 to vector<8x2xf32>
    %33 = arith.mulf %31, %32 : vector<8x2xf32>
    %34 = vector.extract_strided_slice %33 {offsets = [0, 0], sizes = [8, 1], strides = [1, 1]} : vector<8x2xf32> to vector<8x1xf32>
    %35 = vector.extract_strided_slice %33 {offsets = [0, 1], sizes = [8, 1], strides = [1, 1]} : vector<8x2xf32> to vector<8x1xf32>
    %36 = arith.subf %34, %35 : vector<8x1xf32>
    %37 = arith.negf %36 : vector<8x1xf32>
    %38 = math.exp %37 : vector<8x1xf32>
    %cst_21 = arith.constant 1.000000e+00 : f32
    %39 = vector.broadcast %cst_21 : f32 to vector<8x1xf32>
    %40 = arith.addf %39, %38 : vector<8x1xf32>
    %41 = arith.divf %39, %40 : vector<8x1xf32>
    %cst_22 = arith.constant 1.000000e+00 : f32
    %42 = vector.broadcast %cst_22 : f32 to vector<8x1xf32>
    %43 = arith.subf %42, %41 : vector<8x1xf32>
    %44 = tpu.concatenate %41, %43 in 1 : vector<8x1xf32>, vector<8x1xf32> -> vector<8x2xf32>
    %c8_i32 = arith.constant 8 : i32
    %45 = arith.muli %1, %c8_i32 : i32
    %46 = tpu.iota {dimensions = array<i32: 0>} : vector<8x1xi32>
    %47 = vector.broadcast %45 : i32 to vector<8x1xi32>
    %48 = arith.addi %47, %46 : vector<8x1xi32>
    %c8_i32_23 = arith.constant 8 : i32
    %49 = vector.broadcast %c8_i32_23 : i32 to vector<8x1xi32>
    %50 = arith.cmpi slt, %48, %49 : vector<8x1xi32>
    %cst_24 = arith.constant 0.000000e+00 : f32
    %51 = vector.shape_cast %50 : vector<8x1xi1> to vector<8x1xi1>
    %52 = vector.broadcast %51 : vector<8x1xi1> to vector<8x2xi1>
    %53 = vector.broadcast %cst_24 : f32 to vector<8x2xf32>
    %54 = arith.select %52, %44, %53 : vector<8x2xi1>, vector<8x2xf32>
    %cst_25 = arith.constant dense<0.000000e+00> : vector<2xf32>
    %55 = vector.multi_reduction <add>, %54, %cst_25 [0] : vector<8x2xf32> to vector<2xf32>
    %56 = vector.shape_cast %55 : vector<2xf32> to vector<1x2xf32>
    %57 = vector.shape_cast %56 : vector<1x2xf32> to vector<1x2xf32>
    %58 = vector.broadcast %57 : vector<1x2xf32> to vector<8x2xf32>
    %c0_i32 = arith.constant 0 : i32
    %59 = arith.cmpi eq, %arg1, %c0_i32 : i32
    %60 = arith.extui %59 : i1 to i32
    %c0_i32_26 = arith.constant 0 : i32
    %61 = arith.cmpi ne, %60, %c0_i32_26 : i32
    scf.if %61 {
      %c0_29 = arith.constant 0 : index
      %c0_30 = arith.constant 0 : index
      %65 = vector.load %arg10[%c0_29, %c0_30] : memref<8x2xf32, #tpu.memory_space<vmem>>, vector<8x2xf32>
      tpu.vector_store %arg10[%c0_29, %c0_30], %58 {strides = array<i32>} : memref<8x2xf32, #tpu.memory_space<vmem>>, vector<8x2xf32>,
    } else {
    }
    %c0_i32_27 = arith.constant 0 : i32
    %62 = arith.cmpi sgt, %arg1, %c0_i32_27 : i32
    %63 = arith.extui %62 : i1 to i32
    %c0_i32_28 = arith.constant 0 : i32
    %64 = arith.cmpi ne, %63, %c0_i32_28 : i32
    scf.if %64 {
      %c0_29 = arith.constant 0 : index
      %c0_30 = arith.constant 0 : index
      %65 = vector.load %arg10[%c0_29, %c0_30] : memref<8x2xf32, #tpu.memory_space<vmem>>, vector<8x2xf32>
      %66 = arith.addf %65, %58 : vector<8x2xf32>
      %c0_31 = arith.constant 0 : index
      %c0_32 = arith.constant 0 : index
      %67 = vector.load %arg10[%c0_31, %c0_32] : memref<8x2xf32, #tpu.memory_space<vmem>>, vector<8x2xf32>
      tpu.vector_store %arg10[%c0_31, %c0_32], %66 {strides = array<i32>} : memref<8x2xf32, #tpu.memory_space<vmem>>, vector<8x2xf32>,
    } else {
    }
    return
  }
  func.func @transform_0(%arg0: i32, %arg1: i32) -> (i32, i32) {
    %c1_i32 = arith.constant 1 : i32
    %0 = arith.muli %arg0, %c1_i32 : i32
    %1 = arith.addi %0, %arg1 : i32
    %c0_i32 = arith.constant 0 : i32
    %2 = arith.minsi %1, %c0_i32 : i32
    %c0_i32_0 = arith.constant 0 : i32
    %c0_i32_1 = arith.constant 0 : i32
    return %2, %c0_i32_0 : i32, i32
  }
  func.func @transform_1(%arg0: i32, %arg1: i32) -> (i32, i32) {
    %c1_i32 = arith.constant 1 : i32
    %0 = arith.muli %arg0, %c1_i32 : i32
    %1 = arith.addi %0, %arg1 : i32
    %c0_i32 = arith.constant 0 : i32
    %2 = arith.minsi %1, %c0_i32 : i32
    %c0_i32_0 = arith.constant 0 : i32
    %c0_i32_1 = arith.constant 0 : i32
    return %2, %c0_i32_0 : i32, i32
  }
  func.func @transform_2(%arg0: i32, %arg1: i32) -> (i32, i32) {
    %c0_i32 = arith.constant 0 : i32
    %c0_i32_0 = arith.constant 0 : i32
    %c0_i32_1 = arith.constant 0 : i32
    return %c0_i32, %c0_i32_0 : i32, i32
  }
  func.func @transform_3(%arg0: i32, %arg1: i32) -> (i32, i32) {
    %c0_i32 = arith.constant 0 : i32
    %c0_i32_0 = arith.constant 0 : i32
    %c0_i32_1 = arith.constant 0 : i32
    return %c0_i32, %c0_i32_0 : i32, i32
  }
  func.func @transform_4(%arg0: i32, %arg1: i32) -> (i32, i32) {
    %c0_i32 = arith.constant 0 : i32
    %c0_i32_0 = arith.constant 0 : i32
    %c0_i32_1 = arith.constant 0 : i32
    return %c0_i32, %c0_i32_0 : i32, i32
  }
  func.func @transform_5(%arg0: i32, %arg1: i32) -> (i32, i32) {
    %c0_i32 = arith.constant 0 : i32
    %c0_i32_0 = arith.constant 0 : i32
    %c0_i32_1 = arith.constant 0 : i32
    return %c0_i32, %c0_i32_0 : i32, i32
  }
  func.func @transform_6(%arg0: i32, %arg1: i32) -> (i32, i32) {
    %c0_i32 = arith.constant 0 : i32
    %c0_i32_0 = arith.constant 0 : i32
    %c0_i32_1 = arith.constant 0 : i32
    return %c0_i32, %c0_i32_0 : i32, i32
  }
  func.func @transform_7(%arg0: i32, %arg1: i32) -> (i32, i32) {
    %c0_i32 = arith.constant 0 : i32
    %c0_i32_0 = arith.constant 0 : i32
    %c0_i32_1 = arith.constant 0 : i32
    return %c0_i32, %c0_i32_0 : i32, i32
  }
  func.func @transform_8(%arg0: i32, %arg1: i32) -> (i32, i32) {
    %c0_i32 = arith.constant 0 : i32
    %c0_i32_0 = arith.constant 0 : i32
    return %arg0, %c0_i32 : i32, i32
  }
}

</mosaic_0001>

<bundles_post_ra>
// kernel: tpu_custom_call.1
= control target key start
LH: loop header
LB: loop body
LE: loop exit
PB: predicated region body
PF: predicated region fallthrough
CT: control target
= control target key end

     0   :  { %s1436_s27 = smov 0   ;;  %s1438_s28 = smov 0   ;;  %s1645_s0 = inlined_call_operand.vmem [shape: f32[8,16], index: 0, kind: input, shape index: {}]   ;;  %s1646_s1 = inlined_call_operand.vmem [shape: f32[8,16], index: 1, kind: input, shape index: {}]   ;;  %s1647_s2 = inlined_call_operand.vmem [shape: bf16[32,500], index: 2, kind: input, shape index: {}]   ;;  %s1648_s3 = inlined_call_operand.vmem [shape: f32[1,500], index: 3, kind: input, shape index: {}]   ;;  %s1649_s4 = inlined_call_operand.vmem [shape: bf16[500,100], index: 4, kind: input, shape index: {}]   ;;  %s1650_s5 = inlined_call_operand.vmem [shape: f32[1,100], index: 5, kind: input, shape index: {}]   ;;  %s1651_s6 = inlined_call_operand.vmem [shape: bf16[100,2], index: 6, kind: input, shape index: {}]   ;;  %s1652_s7 = inlined_call_operand.vmem [shape: f32[1,2], index: 7, kind: input, shape index: {}]   ;;  %s1653_s8 = inlined_call_operand.vmem [shape: f32[16,2], index: 8, kind: output, shape index: {}]  }
   0x1   :  { %s1440_s29 = smov 0  }
   0x2 LB: > { %s30_s30 = sadd.s32 1, %s1379_s28  ;;  %p1133_p0 = scmp.ge.s32.totalorder %s1383_s29, 1  ;;  %s1383_s29 = sphi %s1440_s29, %s18_s29   ;;  %s1379_s28 = sphi %s1438_s28, %s1655_s28   ;;  %s1375_s27 = sphi %s1436_s27, %s1654_s27  }
   0x3   : > { %p32_p1 = scmp.ge.s32.totalorder %s30_s30, 2  ;;  %p306_p2 = scmp.lt.s32.totalorder %s1383_s29, 3 }
   0x5   : > { %s1657_s30 = smov (%p32_p1, %s30_s30), 0  ;;  %p307_p3 = pnand %p1133_p0, %p306_p2 }
   0x6   : > { %p349_p4 = scmp.lt.s32.totalorder (!%p307_p3), %s1375_s27, 0  ;;  %s1386_s10 = smov (!%p307_p3), 16  }
   0x7   : > { %310 = sbr.rel (%p307_p3) target bundleno = 1060 (0x424), region = 52  ;;  %s1389_s12 = smov (!%p307_p3), 127  }
   0x8   : > { %s1390_s14 = smov (!%p307_p3), 1   ;;  %s1198_s15 = sshll.u32 (!%p307_p3), %s1375_s27, 3 }
   0x9   : > { %p368_p5 = scmp.lt.s32.totalorder (!%p307_p3), %s1375_s27, 1 }
   0xc   : > { %v1302_v0 = vld [vmem:[%s1647_s2 + $0x24] ss:$16 sps:$4 sm:$0xff]   ;;  %v1304_v1 = vld [vmem:[%s1647_s2 + $0x20] ss:$16 sps:$4 sm:$0xff]   ;;  %s350_s13 = scalar_select %p349_p4, %s1375_s27, 0  ;;  %v1385_v3 = vmov 0   ;;  %v393_v47 = vlaneseq }
   0xd   : > { %469 = vmatprep.subr.bf16.mxu1 %v1302_v0  ;;  %v1305_v2 = vld [vmem:[%s1647_s2 + $0x4] ss:$16 sps:$4 sm:$0xff]   ;;  %489 = vmatprep.mubr.bf16.mxu1 %v1385_v3  ;;  %v1307_v4 = vld [vmem:[%s1647_s2] ss:$16 sps:$4 sm:$0xff]   ;;  %v1310_v5 = vld [vmem:[%s1647_s2 + $0x2c] ss:$16 sps:$4 sm:$0xff]  }
   0xe   : > { %470 = vmatpush1.bf16.msra.mxu1 %v1304_v1  ;;  %s1659_s13 = smov (!%p349_p4, %s350_s13), 0  ;;  %v1314_v6 = vld [vmem:[%s1649_s4 + $0x78] sm:$0xff]   ;;  %v1316_v9 = vld [vmem:[%s1649_s4 + $0x70] sm:$0xff]   ;;  %v1318_v11 = vld [vmem:[%s1649_s4 + $0x68] sm:$0xff]   ;;  %vm380_vm0 = vcmask 130048   ;;  %vm453_vm1 = vcmask 261120  }
   0xf   : > { %471 = vmatprep.subr.bf16.mxu1 %v1305_v2  ;;  %s1137_s20 = sshll.u32 %s1659_s13, 3  ;;  %v1315_v7 = vld [vmem:[%s1649_s4 + $0x38] sm:$0xff]   ;;  %1201 = vmatprep.subr.bf16.mxu0 %v1314_v6  ;;  %v1317_v10 = vld [vmem:[%s1649_s4 + $0x30] sm:$0xff]   ;;  %v1320_v12 = vld [vmem:[%s1649_s4 + $0x28] sm:$0xff]   ;;  %vm810_vm2 = vcmask 1041408   ;;  %v1387_v46 = vmov 0.0  }
  0x10   : > { %s364_s23 = scalar_lea.vmem %s1646_s1, %s1137_s20  ;;  %1202 = vmatpush3.bf16.msra.mxu0 %v1315_v7  ;;  %v1322_v13 = vld [vmem:[%s1649_s4 + $0x60] sm:$0xff]   ;;  %v1326_v15 = vld [vmem:[%s1649_s4 + $0x58] sm:$0xff]   ;;  %v1330_v17 = vld [vmem:[%s1649_s4 + $0x50] sm:$0xff]   ;;  %s354_s18 = scalar_lea.vmem %s1645_s0, %s1137_s20  ;;  %v1592_v48 = vshrl.u32 %v393_v47, 7  ;;  %vm806_vm3 = vcmask 949248   ;;  %vm1388_vm4 = vmmov 0  }
  0x11   : > { %v375_v8 = vld [vmem:[%s364_s23] sm:$0xff]  ;;  %1203 = vmatprep.subr.bf16.mxu0 %v1316_v9  ;;  %v1328_v16 = vld [vmem:[%s1649_s4 + $0x18] sm:$0xff]   ;;  %v1332_v18 = vld [vmem:[%s1649_s4 + $0x10] sm:$0xff]   ;;  %vm955_vm5 = vcmask 818176   ;;  %vm1025_vm6 = vcmask 7168   ;;  %vm1036_vm8 = vcmask 15360  }
  0x12   : > { %472 = vmatpush1.bf16.msra.mxu1 %v1307_v4  ;;  %377 = vrot.lane.b32.xlu0 %v375_v8, %s1386_s10  ;;  %v1324_v14 = vld [vmem:[%s1649_s4 + $0x20] sm:$0xff]   ;;  %v1308_v22 = vld [vmem:[%s1647_s2 + $0x28] ss:$16 sps:$4 sm:$0xff]   ;;  %v1313_v24 = vld [vmem:[%s1647_s2 + $0xc] ss:$16 sps:$4 sm:$0xff]   ;;  %v395_v49 = vsub.s32 0, %v1592_v48 }
  0x13   : > { %510 = vmatprep.subr.bf16.mxu1 %v1310_v5  ;;  %v374_v19 = vld [vmem:[%s354_s18] sm:$0xff]  ;;  %v1311_v25 = vld [vmem:[%s1647_s2 + $0x8] ss:$16 sps:$4 sm:$0xff]   ;;  %v1323_v28 = vld [vmem:[%s1649_s4 + $0xf0] sm:$0xff]   ;;  %v399_v51 = vsub.s32 1, %v1592_v48  ;;  %v403_v56 = vsub.s32 2, %v1592_v48 }
  0x14   : > { %1204 = vmatpush3.bf16.msra.mxu0 %v1317_v10  ;;  %v1319_v26 = vld [vmem:[%s1649_s4 + $0xf8] ss:$0 sps:$4 sm:$0x33]   ;;  %v1325_v29 = vld [vmem:[%s1649_s4 + $0xb0] sm:$0xff]   ;;  %v1327_v30 = vld [vmem:[%s1649_s4 + $0xe8] sm:$0xff]   ;;  %v407_v59 = vsub.s32 3, %v1592_v48 }
  0x15   : > { %1205 = vmatprep.subr.bf16.mxu0 %v1318_v11  ;;  %v1321_v27 = vld [vmem:[%s1649_s4 + $0xb8] sm:$0xff]   ;;  %v1329_v31 = vld [vmem:[%s1649_s4 + $0xa8] sm:$0xff]   ;;  %v1331_v32 = vld [vmem:[%s1649_s4 + $0xe0] sm:$0xff]   ;;  %s1661_s27 = smov (!%p368_p5, %s1375_s27), 1 }
  0x16   : > { %v1333_v33 = vld [vmem:[%s1649_s4 + $0xa0] sm:$0xff]   ;;  %v1334_v34 = vld [vmem:[%s1649_s4 + $0x48] sm:$0xff]   ;;  %v1335_v35 = vld [vmem:[%s1649_s4 + $0xd8] sm:$0xff]   ;;  %s1142_s16 = sshll.u32 %s1661_s27, 3 }
  0x17   : > { %v1336_v36 = vld [vmem:[%s1649_s4 + $0x8] sm:$0xff]   ;;  %v1337_v37 = vld [vmem:[%s1649_s4 + $0x98] sm:$0xff]   ;;  %v1338_v38 = vld [vmem:[%s1649_s4 + $0x40] sm:$0xff]   ;;  %s371_s19 = scalar_lea.vmem %s1653_s8, %s1142_s16 }
  0x18   : > { %1206 = vmatpush3.bf16.msra.mxu0 %v1320_v12  ;;  %v1339_v39 = vld [vmem:[%s1649_s4 + $0xd0] sm:$0xff]   ;;  %v1340_v40 = vld [vmem:[%s1649_s4] sm:$0xff]   ;;  %v1342_v42 = vld [vmem:[%s1649_s4 + $0xc8] sm:$0xff]  }
  0x19   : > { %1207 = vmatprep.subr.bf16.mxu0 %v1322_v13  ;;  %v1341_v41 = vld [vmem:[%s1649_s4 + $0x90] sm:$0xff]   ;;  %v1343_v43 = vld [vmem:[%s1649_s4 + $0x88] sm:$0xff]   ;;  %v1344_v44 = vld [vmem:[%s1649_s4 + $0xc0] sm:$0xff]  }
  0x1a   : > { %v1345_v45 = vld [vmem:[%s1649_s4 + $0x80] sm:$0xff]   ;;  %v1346_v62 = vld [vmem:[%s1651_s6 + $0x30] ss:$0 sps:$4 sm:$0x33]   ;;  %v1347_v10 = vld [vmem:[%s1651_s6 + $0x28] sm:$0xff]  }
  0x1b   : > { %v391_v50 = vld [vmem:[%s1648_s3] sm:$0xf]  ;;  %v960_v6 = vsel %vm810_vm2, %v1346_v62, 0 }
  0x1c   : > { %1208 = vmatpush3.bf16.msra.mxu0 %v1324_v14  ;;  %v396_v52 = vrot.slane %v391_v50, %v395_v49  ;;  %v400_v53 = vrot.slane %v391_v50, %v399_v51  ;;  %v404_v63 = vrot.slane %v391_v50, %v403_v56  ;;  %v1030_v56 = vstv %s1198_s15 }
  0x1d   : > { %1209 = vmatprep.subr.bf16.mxu0 %v1326_v15 }
  0x20   : > { %1210 = vmatpush3.bf16.msra.mxu0 %v1328_v16 }
  0x21   : > { %1211 = vmatprep.subr.bf16.mxu0 %v1330_v17  ;;  %v1348_v17 = vld [vmem:[%s1651_s6 + $0x20] sm:$0xff]  }
  0x24   : > { %1212 = vmatpush3.bf16.msra.mxu0 %v1332_v18  ;;  %v1349_v18 = vld [vmem:[%s1651_s6 + $0x18] sm:$0xff]  }
  0x25   : > { %1213 = vmatprep.subr.bf16.mxu0 %v1334_v34 }
  0x28   : > { %1214 = vmatpush3.bf16.msra.mxu0 %v1336_v36 }
  0x29   : > { %1215 = vmatprep.subr.bf16.mxu0 %v1338_v38 }
  0x2c   : > { %1216 = vmatpush3.bf16.msra.mxu0 %v1340_v40 }
  0x2d   : > { %1253 = vmatprep.subr.bf16.mxu0 %v1387_v46 }
  0x84   : > { %v378_v20 = vpop.permute.xlu0 %377 }
  0x85   : > { %v381_v21 = vsel %vm380_vm0, %v374_v19, %v378_v20  ;;  %v1350_v19 = vld [vmem:[%s1651_s6 + $0x10] sm:$0xff]   ;;  %v1351_v20 = vld [vmem:[%s1651_s6 + $0x8] sm:$0xff]  }
  0x86   : > { %v382_v23 = vpack.c.bf16 %v381_v21, %v381_v21  ;;  %v1352_v21 = vld [vmem:[%s1651_s6] sm:$0xff]  }
  0x88   : > { %1151 = vmatmul.mubr.msk.bf16.vlgmr.msra.gmra.mxu1 %vm453_vm1, %v382_v23 }
  0x89   : > { %511 = vmatpush1.bf16.msra.mxu1 %v1308_v22  ;;  %530 = vmatprep.mubr.bf16.mxu1 %v1385_v3  ;;  %v408_v3 = vrot.slane %v391_v50, %v407_v59 }
  0x8a   : > { %512 = vmatprep.subr.bf16.mxu1 %v1313_v24 }
  0x8d   : > { %513 = vmatpush1.bf16.msra.mxu1 %v1311_v25 }
  0x8e   : > { %1271 = vmatprep.subr.msk.bf16.mxu1 %vm810_vm2, %v1319_v26 }
  0x90   : > { %1152 = vmatmul.mubr.msk.bf16.vlgmr.msra.gmra.mxu1 %vm453_vm1, %v382_v23 }
  0x91   : > { %1224 = vmatpush3.bf16.msra.mxu1 %v1321_v27  ;;  %v1153_v27 = vld [vmem:[%s1650_s5] ss:$0 sm:$0xff] }
  0x92   : > { %1225 = vmatprep.subr.bf16.mxu1 %v1323_v28 }
  0x95   : > { %1226 = vmatpush3.bf16.msra.mxu1 %v1325_v29 }
  0x96   : > { %1227 = vmatprep.subr.bf16.mxu1 %v1327_v30 }
  0x99   : > { %1228 = vmatpush3.bf16.msra.mxu1 %v1329_v31 }
  0x9a   : > { %1229 = vmatprep.subr.bf16.mxu1 %v1331_v32 }
  0x9d   : > { %1230 = vmatpush3.bf16.msra.mxu1 %v1333_v33 }
  0x9e   : > { %1231 = vmatprep.subr.bf16.mxu1 %v1335_v35 }
  0xa1   : > { %1232 = vmatpush3.bf16.msra.mxu1 %v1337_v37  ;;  %v1187_v37 = vld [vmem:[%s1652_s7] ss:$0 sm:$0xff] }
  0xa2   : > { %1233 = vmatprep.subr.bf16.mxu1 %v1339_v39 }
  0xa5   : > { %1234 = vmatpush3.bf16.msra.mxu1 %v1341_v41 }
  0xa6   : > { %1235 = vmatprep.subr.bf16.mxu1 %v1342_v42 }
  0xa9   : > { %1236 = vmatpush3.bf16.msra.mxu1 %v1343_v43 }
  0xaa   : > { %1237 = vmatprep.subr.bf16.mxu1 %v1344_v44 }
  0xad   : > { %1238 = vmatpush3.bf16.msra.mxu1 %v1345_v45 }
 0x148   : > { %v491_v54 = vpop.f32.mrf.mxu1 }
 0x149   : > { %v492_v55 = vadd.f32 %v491_v54, %v396_v52 }
 0x14a   : > { %v493_v57 = vpop.f32.mrf.mxu1 }
 0x14b   : > { %v494_v58 = vadd.f32 %v493_v57, %v400_v53  ;;  %v539_v60 = vmax.f32 %v492_v55, 0.0  ;;  %v1031_v57 = vadd.s32 %v1030_v56, %v1592_v48 }
 0x14c   : > { %v495_v61 = vpop.f32.mrf.mxu1 }
 0x14d   : > { %v540_v0 = vmax.f32 %v494_v58, 0.0  ;;  %v543_v4 = vpack.c.bf16 %v539_v60, %v539_v60  ;;  %vm1032_vm7 = vcmp.lt.s32.totalorder %v1031_v57, 8 }
 0x14e   : > { %v496_v1 = vpop.f32.mrf.mxu1 }
 0x14f   : > { %v544_v2 = vpack.c.bf16 %v540_v0, %v540_v0 }
 0x150   : > { %v532_v5 = vpop.f32.mrf.mxu1 }
 0x151   : > { %v533_v7 = vadd.f32 %v532_v5, %v404_v63  ;;  %846 = vmatprep.mubr.bf16.mxu0 %v544_v2 }
 0x152   : > { %v534_v8 = vpop.f32.mrf.mxu1  ;;  %847 = vmatmul.mubr.bf16.vlgmr.msra.gmra.mxu0 %v543_v4 }
 0x153   : > { %v535_v9 = vadd.f32 %v534_v8, %v408_v3  ;;  %1254 = vmatpush3.bf16.msra.mxu0 %v960_v6  ;;  %v541_v11 = vmax.f32 %v533_v7, 0.0  ;;  %1267 = vmatprep.mubr.msk.bf16.mxu0 %vm1388_vm4, %v1387_v46 }
 0x154   : > { %v536_v12 = vpop.f32.mrf.mxu1  ;;  %1255 = vmatprep.subr.bf16.mxu0 %v1387_v46 }
 0x155   : > { %v542_v13 = vmax.f32 %v535_v9, 0.0  ;;  %v545_v16 = vpack.c.bf16 %v541_v11, %v541_v11 }
 0x156   : > { %v537_v14 = vpop.f32.mrf.mxu1 }
 0x157   : > { %v546_v15 = vpack.c.bf16 %v542_v13, %v542_v13  ;;  %1256 = vmatpush3.bf16.msra.mxu0 %v1347_v10 }
 0x158   : > { %1257 = vmatprep.subr.bf16.mxu0 %v1387_v46 }
 0x159   : > { %1186 = vmatprep.mubr.msk.bf16.mxu1 %vm806_vm3, %v546_v15 }
 0x15a   : > { %887 = vmatmul.mubr.bf16.vlgmr.msra.gmra.mxu1 %v545_v16 }
 0x15b   : > { %1258 = vmatpush3.bf16.msra.mxu0 %v1348_v17 }
 0x15c   : > { %1259 = vmatprep.subr.bf16.mxu0 %v1387_v46 }
 0x15f   : > { %1260 = vmatpush3.bf16.msra.mxu0 %v1349_v18 }
 0x160   : > { %1261 = vmatprep.subr.bf16.mxu0 %v1387_v46 }
 0x163   : > { %1262 = vmatpush3.bf16.msra.mxu0 %v1350_v19 }
 0x164   : > { %1263 = vmatprep.subr.bf16.mxu0 %v1387_v46 }
 0x167   : > { %1264 = vmatpush3.bf16.msra.mxu0 %v1351_v20 }
 0x168   : > { %1265 = vmatprep.subr.bf16.mxu0 %v1387_v46 }
 0x16b   : > { %1266 = vmatpush3.bf16.msra.mxu0 %v1352_v21 }
 0x212   : > { %v1217_v22 = vpop.f32.mrf.mxu0 }
 0x214   : > { %v1218_v23 = vpop.f32.mrf.mxu0 }
 0x215   : > { %v1219_v26 = vadd.f32 %v1218_v23, %v1217_v22 }
 0x216   : > { %v1220_v24 = vpop.f32.mrf.mxu0 }
 0x217   : > { %v849_v30 = vadd.f32 %v1219_v26, %v1153_v27 }
 0x218   : > { %v1221_v25 = vpop.f32.mrf.mxu0 }
 0x21a   : > { %v1239_v28 = vpop.f32.mrf.mxu1 }
 0x21c   : > { %v1240_v29 = vpop.f32.mrf.mxu1 }
 0x21d   : > { %v1241_v31 = vadd.f32 %v1240_v29, %v1239_v28 }
 0x21e   : > { %v1242_v32 = vpop.f32.mrf.mxu1 }
 0x21f   : > { %v889_v33 = vadd.f32 %v1241_v31, %v849_v30 }
 0x220   : > { %v1243_v34 = vpop.f32.mrf.mxu1 }
 0x221   : > { %v894_v35 = vmax.f32 %v889_v33, 0.0 }
 0x223   : > { %v895_v36 = vpack.c.bf16 %v894_v35, %v894_v35 }
 0x225   : > { %1268 = vmatmul.mubr.msk.bf16.vlgmr.msra.gmra.mxu0 %vm955_vm5, %v895_v36 }
 0x2e5   : > { %v996_v38 = vpop.f32.mrf.mxu0 }
 0x2e6   : > { %v997_v39 = vadd.f32 %v1187_v37, %v996_v38 }
 0x2e7   : > { %v1269_v40 = vpop.f32.mrf.mxu0 }
 0x2e8   : > { %v1196_v41 = vmul.f32 -1.442695, %v997_v39 }
 0x2e9   : > { %v999_v42 = vpop.f32.mrf.mxu0 }
 0x2ea   : > { %1353 = vpow2.f32 %v1196_v41 }
 0x2eb   : > { %v1270_v43 = vpop.f32.mrf.mxu0 }
 0x2f7   : > { %v1354_v44 = vpop.eup %1353 }
 0x2f8   : > { %v1005_v45 = vadd.f32 1.0, %v1354_v44 }
 0x2fa   : > { %1355 = vrcp.f32 %v1005_v45 }
 0x307   : > { %v1356_v46 = vpop.eup %1355 }
 0x308   : > { %v1008_v47 = vmul.f32 0.1, %v1356_v46 }
 0x30a   : > { %1010 = vrot.lane.b32.xlu0 %v1008_v47, %s1389_s12 }
 0x37c   : > { %v1011_v49 = vpop.permute.xlu0 %1010 }
 0x37d   : > { %v1013_v50 = vsub.f32 %v1008_v47, %v1011_v49 }
 0x37f   : > { %v1197_v51 = vmul.f32 -1.442695, %v1013_v50 }
 0x381   : > { %1357 = vpow2.f32 %v1197_v51 }
 0x38e   : > { %v1358_v52 = vpop.eup %1357 }
 0x38f   : > { %v1017_v53 = vadd.f32 1.0, %v1358_v52 }
 0x391   : > { %1359 = vrcp.f32 %v1017_v53 }
 0x39e   : > { %v1360_v54 = vpop.eup %1359 }
 0x39f   : > { %v1020_v55 = vsub.f32 1.0, %v1360_v54 }
 0x3a1   : > { %1022 = vrot.lane.b32.xlu1 %v1020_v55, %s1390_s14 }
 0x413   : > { %v1023_v58 = vpop.permute.xlu1 %1022 }
 0x414   : > { %v1026_v59 = vsel %vm1025_vm6, %v1360_v54, %v1023_v58 }
 0x415   : > { %v1035_v60 = vsel %vm1032_vm7, %v1026_v59, 0.0 }
 0x416   : > { %v1037_v61 = vsel %vm1036_vm8, %v1035_v60, 0.0 }
 0x417   : > { %v1038_v62 = vrot.slane %v1037_v61, 4 }
 0x419   : > { %v1039_v63 = vadd.f32 %v1038_v62, %v1037_v61 }
 0x41b   : > { %v1040_v0 = vrot.slane %v1039_v63, 2 }
 0x41d   : > { %v1041_v1 = vadd.f32 %v1040_v0, %v1039_v63 }
 0x41f   : > { %v1042_v2 = vrot.slane %v1041_v1, 1 }
 0x421   : > { %v1043_v48 = vadd.f32 %v1042_v2, %v1041_v1 }
 0x423   : > { %1048 = vst.msk [vmem:[%s371_s19] sm:$0xff] %vm1036_vm8, %v1043_v48 }
 0x424 PF: > { %s18_s29 = sadd.s32 1, %s1383_s29   ;;  %s1654_s27 = smov %s1379_s28 }
 0x425   : > { %p15_p6 = scmp.ge.s32.totalorder %s18_s29, 4   ;;  %s1655_s28 = smov %s1657_s30 }
 0x427   :  { %17 = sbr.rel (!%p15_p6) target bundleno = 2 (0x2), region = 93 }

</bundles_post_ra>
